<compile_context>
chip_gen: v7x
topology: tpu7x:2x2x1
jax: 0.10.0
libtpu: 0.0.40
codegen_flags: <defaults>
</compile_context>

<pallas_src>
import jax
import jax.numpy as jnp
from jax.experimental import pallas as pl
from jax.experimental.pallas import tpu as pltpu


def _round_up(x, m):
    return (x + m - 1) // m * m


def _vmem_budget_bytes():
    """Generation-aware VMEM budget with headroom for Mosaic internal scratch."""
    try:
        cap = pltpu.get_tpu_info().vmem_capacity_bytes
    except Exception:
        cap = 64 << 20  # conservative (v7x-sized) fallback
    # ~85%: ~54 MiB on 64 MiB v7x parts, ~108 MiB on 128 MiB v5e/v6e parts.
    return int(cap * 0.85)


def _resident_footprint(tm, D, H):
    bf = 2
    w = 2 * (D * H + H * D) * bf          # weights (counted double-buffered, conservative)
    io = 2 * 2 * tm * D * bf              # x + out tiles, double-buffered
    h = tm * H * 4 + tm * H * bf          # f32 matmul result + bf16 relu^2 intermediate
    return w + io + h


def _tiled_footprint(tm, th, D, H):
    bf = 2
    w = 2 * (D * th + th * D) * bf        # weight H-tiles, double-buffered
    io = 2 * 2 * tm * D * bf              # x + out tiles, double-buffered
    acc = tm * D * 4                      # f32 accumulator scratch
    h = tm * th * 4 + tm * th * bf        # f32 matmul result + bf16 relu^2 intermediate
    return w + io + acc + h


def _pick_h_tile(H, preferred, tm, D, budget):
    """Largest multiple-of-128 H tile <= preferred that fits the VMEM budget,
    preferring exact divisors of H (no weight padding needed)."""
    cands = [c for c in (1024, 768, 512, 384, 256, 128) if c <= max(preferred, 128)]
    fitting = [c for c in cands if _tiled_footprint(tm, c, D, H) <= budget]
    if not fitting:
        return 128
    for c in fitting:
        if H % c == 0:
            return c
    return fitting[0]


# ---------------------------------------------------------------------------
# Kernels
# ---------------------------------------------------------------------------
def _mlp_kernel_resident(x_ref, fcw_ref, pjw_ref, o_ref):
    # x_ref: (tm, D)  fcw_ref: (D, H)  pjw_ref: (H, D)  -- canonical (M,K)x(K,N)
    h = jnp.dot(x_ref[...], fcw_ref[...], preferred_element_type=jnp.float32)
    h = h.astype(jnp.bfloat16)            # match torch bf16 F.linear output dtype
    h = jnp.maximum(h, 0)                 # relu
    h = h * h                             # .square()
    o_ref[...] = jnp.dot(h, pjw_ref[...],
                         preferred_element_type=jnp.float32).astype(o_ref.dtype)


def _mlp_kernel_tiled(x_ref, fcw_ref, pjw_ref, o_ref, acc_ref):
    # x_ref: (tm, D)  fcw_ref: (D, th)  pjw_ref: (th, D)  acc_ref: (tm, D) f32
    k = pl.program_id(1)

    @pl.when(k == 0)
    def _():
        acc_ref[...] = jnp.zeros_like(acc_ref)

    h = jnp.dot(x_ref[...], fcw_ref[...], preferred_element_type=jnp.float32)
    h = h.astype(jnp.bfloat16)
    h = jnp.maximum(h, 0)
    h = h * h
    acc_ref[...] += jnp.dot(h, pjw_ref[...], preferred_element_type=jnp.float32)

    @pl.when(k == pl.num_programs(1) - 1)
    def _():
        o_ref[...] = acc_ref[...].astype(o_ref.dtype)


# ---------------------------------------------------------------------------
# Wrapper
# ---------------------------------------------------------------------------
def mlp_forward(x, fc_w, proj_w, *, tm=1024, th=512, force_tiled=False):
    """x: (B, T, D) bf16; fc_w: (H, D) bf16; proj_w: (D, H) bf16 -> (B, T, D) bf16."""
    B, T, D = x.shape
    H, D2 = fc_w.shape
    assert D2 == D and proj_w.shape == (D, H)

    M = B * T
    xm = x.reshape(M, D)

    # One-time canonical-layout transposes (free if weights are stored transposed).
    fc_wt = fc_w.T        # (D, H)
    proj_wt = proj_w.T    # (H, D)

    budget = _vmem_budget_bytes()
    bf = 2
    flops = 4 * M * D * H

    # Row tile: large by default (amortizes the weight stream), multiple of 16
    # (bf16 sublane packing); ensure >=2 M tiles when M allows (v7x megacore).
    tm = min(tm, _round_up(M, 16))
    if M > 512 and pl.cdiv(M, tm) < 2:
        tm = _round_up(pl.cdiv(M, 2), 16)

    # ---------------- Path A: resident weights ----------------
    tm_res = tm
    while tm_res > 256 and _resident_footprint(tm_res, D, H) > budget:
        tm_res //= 2
    resident_ok = (not force_tiled) and _resident_footprint(tm_res, D, H) <= budget

    if resident_ok:
        tm = tm_res
        grid = (pl.cdiv(M, tm),)
        out = pl.pallas_call(
            _mlp_kernel_resident,
            out_shape=jax.ShapeDtypeStruct((M, D), x.dtype),
            grid_spec=pltpu.PrefetchScalarGridSpec(
                num_scalar_prefetch=0,
                grid=grid,
                in_specs=[
                    pl.BlockSpec((tm, D), lambda i: (i, 0)),   # row tile of x
                    pl.BlockSpec((D, H), lambda i: (0, 0)),    # fc_w^T, resident
                    pl.BlockSpec((H, D), lambda i: (0, 0)),    # proj_w^T, resident
                ],
                out_specs=pl.BlockSpec((tm, D), lambda i: (i, 0)),
            ),
            compiler_params=pltpu.CompilerParams(
                dimension_semantics=("parallel",),
                vmem_limit_bytes=budget,
            ),
            cost_estimate=pl.CostEstimate(
                flops=flops, transcendentals=0,
                bytes_accessed=bf * (2 * M * D + 2 * H * D)),   # weights read once
        )(xm, fc_wt, proj_wt)
        return out.reshape(B, T, D)

    # ---------------- Path B: H-tiled reduction ----------------
    th = _pick_h_tile(H, th, tm, D, budget)
    while tm > 256 and _tiled_footprint(tm, th, D, H) > budget:
        tm //= 2

    H_pad = _round_up(H, th)
    if H_pad != H:
        # Zero-padding the hidden dim is exact: relu(0)^2 contributes nothing.
        fc_wt = jnp.pad(fc_wt, ((0, 0), (0, H_pad - H)))
        proj_wt = jnp.pad(proj_wt, ((0, H_pad - H), (0, 0)))

    grid = (pl.cdiv(M, tm), H_pad // th)
    out = pl.pallas_call(
        _mlp_kernel_tiled,
        out_shape=jax.ShapeDtypeStruct((M, D), x.dtype),
        grid_spec=pltpu.PrefetchScalarGridSpec(
            num_scalar_prefetch=0,
            grid=grid,                                          # (M: parallel, H: reduction)
            in_specs=[
                pl.BlockSpec((tm, D), lambda i, k: (i, 0)),     # row tile of x
                pl.BlockSpec((D, th), lambda i, k: (0, k)),     # fc_w^T H-tile
                pl.BlockSpec((th, D), lambda i, k: (k, 0)),     # proj_w^T H-tile
            ],
            out_specs=pl.BlockSpec((tm, D), lambda i, k: (i, 0)),
            scratch_shapes=[pltpu.VMEM((tm, D), jnp.float32)],
        ),
        compiler_params=pltpu.CompilerParams(
            dimension_semantics=("parallel", "arbitrary"),
            vmem_limit_bytes=budget,
        ),
        cost_estimate=pl.CostEstimate(
            flops=flops, transcendentals=0,
            bytes_accessed=bf * (2 * M * D + 2 * grid[0] * H_pad * D)),
    )(xm, fc_wt, proj_wt)
    return out.reshape(B, T, D)


# ---------------------------------------------------------------------------
# Reference + checks
# ---------------------------------------------------------------------------
def init_linear_like(key, shape):
    # Mirrors init_linear: uniform(-bound, bound), bound = sqrt(3) * 0.5 * dim^-0.5
    std = 0.5 * shape[-1] ** (-0.5)
    bound = (3.0 ** 0.5) * std
    return jax.random.uniform(key, shape, jnp.float32, -bound, bound).astype(jnp.bfloat16)


def mlp_reference(x, fc_w, proj_w):
    # Pure-JAX reference with the same dtype flow as the torch bf16 module.
    h = jnp.dot(x, fc_w.T, preferred_element_type=jnp.float32).astype(jnp.bfloat16)
    h = jnp.maximum(h, jnp.bfloat16(0))
    h = h * h
    return jnp.dot(h, proj_w.T, preferred_element_type=jnp.float32).astype(jnp.bfloat16)


def _check(B, T, D, key, force_tiled=False):
    H = 4 * D
    kx, kfc, kproj = jax.random.split(key, 3)
    x = jax.random.normal(kx, (B, T, D), jnp.float32).astype(jnp.bfloat16)
    fc_w = init_linear_like(kfc, (H, D))
    # NOTE: the torch module zero-initializes proj_w (output would be all zeros);
    # use the same deterministic uniform init so the numeric check is meaningful.
    proj_w = init_linear_like(kproj, (D, H))

    out = jax.block_until_ready(mlp_forward(x, fc_w, proj_w, force_tiled=force_tiled))
    ref = mlp_reference(x, fc_w, proj_w)
    assert out.shape == (B, T, D) and out.dtype == jnp.bfloat16
    assert jnp.allclose(out.astype(jnp.float32), ref.astype(jnp.float32),
                        atol=2e-2, rtol=2e-2)


if __name__ == "__main__":
    key = jax.random.PRNGKey(0)
    k1, k2, k3 = jax.random.split(key, 3)

    # Small shape implied by the module (dim=32 -> hdim=128): resident-weights path.
    _check(B=2, T=8, D=32, key=k1)
    # Larger shape with a non-divisible M (partial last row block, no padding).
    _check(B=2, T=99, D=256, key=k2)
    # Same shape, forcing the H-tiled reduction path (v7x-style VMEM-constrained path).
    _check(B=2, T=99, D=256, key=k3, force_tiled=True)

    print("KERNEL_OK")
</pallas_src>

<mosaic_0001>
module attributes {stable_mosaic.version = 11 : i64} {
  func.func @_mlp_kernel_resident(%arg0: i32, %arg1: memref<16x32xbf16, #tpu.memory_space<vmem>>, %arg2: memref<32x128xbf16, #tpu.memory_space<vmem>>, %arg3: memref<128x32xbf16, #tpu.memory_space<vmem>>, %arg4: memref<16x32xbf16, #tpu.memory_space<vmem>>) attributes {dimension_semantics = [#tpu.dimension_semantics<parallel>], iteration_bounds = array<i64: 1>, scalar_prefetch = 0 : i64, scratch_operands = 0 : i64, tpu.core_type = #tpu.core_type<tc>, window_params = [{transform_indices = @transform_0, window_bounds = array<i64: 16, 32>}, {pipeline_mode = #tpu.pipeline_mode<synchronous>, transform_indices = @transform_1, window_bounds = array<i64: 32, 128>}, {pipeline_mode = #tpu.pipeline_mode<synchronous>, transform_indices = @transform_2, window_bounds = array<i64: 128, 32>}, {transform_indices = @transform_3, window_bounds = array<i64: 16, 32>}]} {
    %c0 = arith.constant 0 : index
    %c0_0 = arith.constant 0 : index
    %0 = vector.load %arg1[%c0, %c0_0] : memref<16x32xbf16, #tpu.memory_space<vmem>>, vector<16x32xbf16>
    %c0_1 = arith.constant 0 : index
    %c0_2 = arith.constant 0 : index
    %1 = vector.load %arg2[%c0_1, %c0_2] : memref<32x128xbf16, #tpu.memory_space<vmem>>, vector<32x128xbf16>
    %cst = arith.constant dense<0.000000e+00> : vector<16x128xf32>
    %2 = tpu.matmul %0, %1, %cst {dimension_numbers = #tpu.dot_dimension_numbers<[1], [0], [0], [1], [0, 0, 1, 1], [], []>} : vector<16x32xbf16>, vector<32x128xbf16>, vector<16x128xf32> -> vector<16x128xf32>
    %3 = arith.truncf %2 : vector<16x128xf32> to vector<16x128xbf16>
    %cst_3 = arith.constant 0.000000e+00 : bf16
    %4 = vector.broadcast %cst_3 : bf16 to vector<16x128xbf16>
    %5 = arith.maximumf %3, %4 : vector<16x128xbf16>
    %6 = arith.mulf %5, %5 : vector<16x128xbf16>
    %c0_4 = arith.constant 0 : index
    %c0_5 = arith.constant 0 : index
    %7 = vector.load %arg3[%c0_4, %c0_5] : memref<128x32xbf16, #tpu.memory_space<vmem>>, vector<128x32xbf16>
    %cst_6 = arith.constant dense<0.000000e+00> : vector<16x32xf32>
    %8 = tpu.matmul %6, %7, %cst_6 {dimension_numbers = #tpu.dot_dimension_numbers<[1], [0], [0], [1], [0, 0, 1, 1], [], []>} : vector<16x128xbf16>, vector<128x32xbf16>, vector<16x32xf32> -> vector<16x32xf32>
    %9 = arith.truncf %8 : vector<16x32xf32> to vector<16x32xbf16>
    %c0_7 = arith.constant 0 : index
    %c0_8 = arith.constant 0 : index
    %10 = vector.load %arg4[%c0_7, %c0_8] : memref<16x32xbf16, #tpu.memory_space<vmem>>, vector<16x32xbf16>
    tpu.vector_store %arg4[%c0_7, %c0_8], %9 {strides = array<i32>} : memref<16x32xbf16, #tpu.memory_space<vmem>>, vector<16x32xbf16>,
    return
  }
  func.func @transform_0(%arg0: i32) -> (i32, i32) {
    %c0_i32 = arith.constant 0 : i32
    %c0_i32_0 = arith.constant 0 : i32
    return %arg0, %c0_i32 : i32, i32
  }
  func.func @transform_1(%arg0: i32) -> (i32, i32) {
    %c0_i32 = arith.constant 0 : i32
    %c0_i32_0 = arith.constant 0 : i32
    %c0_i32_1 = arith.constant 0 : i32
    return %c0_i32, %c0_i32_0 : i32, i32
  }
  func.func @transform_2(%arg0: i32) -> (i32, i32) {
    %c0_i32 = arith.constant 0 : i32
    %c0_i32_0 = arith.constant 0 : i32
    %c0_i32_1 = arith.constant 0 : i32
    return %c0_i32, %c0_i32_0 : i32, i32
  }
  func.func @transform_3(%arg0: i32) -> (i32, i32) {
    %c0_i32 = arith.constant 0 : i32
    %c0_i32_0 = arith.constant 0 : i32
    return %arg0, %c0_i32 : i32, i32
  }
}

</mosaic_0001>

<bundles_post_ra>
// kernel: tpu_custom_call.1
= control target key start
LH: loop header
LB: loop body
LE: loop exit
PB: predicated region body
PF: predicated region fallthrough
CT: control target
= control target key end

     0   :  { %v316_v1 = vmov 0.0   ;;  %vm317_vm0 = vmmov 0   ;;  %vm39_vm1 = vcmask 261120   ;;  %s387_s0 = inlined_call_operand.vmem [shape: bf16[16,32], index: 0, kind: input, shape index: {}]   ;;  %s388_s1 = inlined_call_operand.vmem [shape: bf16[32,128], index: 1, kind: input, shape index: {}]   ;;  %s389_s2 = inlined_call_operand.vmem [shape: bf16[128,32], index: 2, kind: input, shape index: {}]   ;;  %s390_s3 = inlined_call_operand.hbm [shape: bf16[16,32], index: 3, kind: output, shape index: {}]  }
   0x1   :  { %v281_v0 = vld [vmem:[%s388_s1] sm:$0xff]   ;;  %247 = vmatprep.subr.bf16.mxu0 %v316_v1  ;;  %255 = vmatprep.subr.bf16.mxu1 %v316_v1  ;;  %v282_v2 = vld [vmem:[%s388_s1 + $0x8] sm:$0xff]   ;;  %v286_v6 = vld [vmem:[%s389_s2 + $0x10] sm:$0xff]  }
   0x2   :  { %248 = vmatpush3.bf16.msra.mxu0 %v281_v0  ;;  %251 = vmatprep.mubr.msk.bf16.mxu0 %vm317_vm0, %v316_v1  ;;  %v284_v3 = vld [vmem:[%s389_s2] sm:$0xff]   ;;  %v285_v5 = vld [vmem:[%s389_s2 + $0x8] sm:$0xff]  }
   0x3   :  { %249 = vmatprep.subr.bf16.mxu0 %v316_v1  ;;  %271 = vmatprep.mubr.msk.bf16.mxu1 %vm317_vm0, %v316_v1  ;;  %v283_v4 = vld [vmem:[%s387_s0] sm:$0xff]  }
   0x4   :  { %256 = vmatpush3.bf16.msra.mxu1 %v284_v3 }
   0x5   :  { %257 = vmatprep.subr.bf16.mxu1 %v316_v1 }
   0x6   :  { %250 = vmatpush3.bf16.msra.mxu0 %v282_v2 }
   0x8   :  { %258 = vmatpush3.bf16.msra.mxu1 %v285_v5 }
   0x9   :  { %252 = vmatmul.mubr.msk.bf16.vlgmr.msra.gmra.mrb[0].mxu0 %vm39_vm1, %v283_v4  ;;  %259 = vmatprep.subr.bf16.mxu1 %v316_v1 }
   0xa   :  { %8 = vsyncpa [#allocation3], 0  ;;  %v287_v7 = vld [vmem:[%s389_s2 + $0x18] sm:$0xff]   ;;  %v288_v8 = vld [vmem:[%s389_s2 + $0x20] sm:$0xff]   ;;  %v318_v17 = vmov 0   ;;  %s319_s5 = smov [#allocation2]  }
   0xb   :  { %v289_v9 = vld [vmem:[%s389_s2 + $0x28] sm:$0xff]   ;;  %v290_v10 = vld [vmem:[%s389_s2 + $0x30] sm:$0xff]   ;;  %v291_v11 = vld [vmem:[%s389_s2 + $0x38] sm:$0xff]   ;;  %s208_s6 = sshll.u32 %s319_s5, 4  ;;  %vm200_vm2 = vcmask 257024   ;;  %s209_s6 = int_to_ptr.vmem [resolvable:$true] %s208_s6 }
   0xc   :  { %260 = vmatpush3.bf16.msra.mxu1 %v286_v6  ;;  %s292_s2 = scalar_lea.vmem %s209_s6, 128  ;;  %p297_p1 = scmp.lt.s32.totalorder %s209_s6, %s209_s6 }
   0xd   :  { %261 = vmatprep.subr.bf16.mxu1 %v316_v1  ;;  %p293_p0 = scmp.ne.s32.totalorder %s209_s6, %s292_s2  ;;  %p298_p2 = scmp.lt.s32.totalorder %s292_s2, %s292_s2 }
   0xf   :  { %p299_p3 = por %p298_p2, %p297_p1 }
  0x10   :  { %262 = vmatpush3.bf16.msra.mxu1 %v287_v7 }
  0x11   :  { %263 = vmatprep.subr.bf16.mxu1 %v316_v1  ;;  %p300_p4 = pnand %p299_p3, %p293_p0 }
  0x14   :  { %264 = vmatpush3.bf16.msra.mxu1 %v288_v8 }
  0x15   :  { %265 = vmatprep.subr.bf16.mxu1 %v316_v1 }
  0x18   :  { %266 = vmatpush3.bf16.msra.mxu1 %v289_v9 }
  0x19   :  { %267 = vmatprep.subr.bf16.mxu1 %v316_v1 }
  0x1c   :  { %268 = vmatpush3.bf16.msra.mxu1 %v290_v10 }
  0x1d   :  { %269 = vmatprep.subr.bf16.mxu1 %v316_v1 }
  0x20   :  { %270 = vmatpush3.bf16.msra.mxu1 %v291_v11 }
  0xdc   :  { %v77_v12 = vpop.f32.mrb[0].mxu0 }
  0xdd   :  { %v253_v13 = vpop.f32.mrb[1].mxu0 }
  0xde   :  { %v80_v14 = vpop.f32.mrb[2].mxu0 }
  0xdf   :  { %v84_v15 = vpack.c.bf16 %v80_v14, %v77_v12  ;;  %v254_v16 = vpop.f32.mrb[3].mxu0 }
  0xe1   :  { %v85_v18 = vmax.bf16 %v318_v17, %v84_v15 }
  0xe3   :  { %v86_v19 = vmul.bf16 %v85_v18, %v85_v18 }
  0xe5   :  { %272 = vmatmul.mubr.bf16.vlgmr.msra.gmra.mrb[0].mxu1 %v86_v19 }
 0x1b8   :  { %v185_v20 = vpop.f32.mrb[0].mxu1 }
 0x1b9   :  { %v233_v21 = vpack.c.bf16 %v185_v20, %v185_v20  ;;  %v273_v22 = vpop.f32.mrb[1].mxu1 }
 0x1ba   :  { %v188_v23 = vpop.f32.mrb[2].mxu1 }
 0x1bb   :  { %201 = vst.msk [vmem:[#allocation2] sm:$0xf] %vm200_vm2, %v233_v21  ;;  %v234_v24 = vpack.c.bf16 %v188_v23, %v188_v23  ;;  %v274_v25 = vpop.f32.mrb[3].mxu1 }
 0x1bd   :  { %202 = vst.msk [vmem:[#allocation2 + $0x4] sm:$0xf] %vm200_vm2, %v234_v24 }
 0x1be   :  { %303 = shalt.err (!%p300_p4)
}
 0x1bf   :  { %s304_s9 = scalar_lea.hbm %s390_s3, 128 }
 0x1c0   :  { %p305_p5 = scmp.ne.s32.totalorder %s390_s3, %s304_s9  ;;  %p308_p6 = scmp.lt.u32.totalorder %s304_s9, %s390_s3 }
 0x1c2   :  { %p310_p7 = pnand %p308_p6, %p305_p5 }
 0x1c4   :  { %313 = shalt.err (!%p310_p7)
}
 0x1c5   :  { %s320_s14 = smov 64   ;;  %s321_s15 = smov 4  }
 0x1c6   :  { %214 = dma.vmem_to_hbm [thread:$0]  %s209_s6, 128, %s390_s3, [#allocation3], %s320_s14, %s320_s14, %s321_s15  }
 0x1c7   :  { %314 = dma.done.wait [#allocation3], 128  }
 0x1c8   :  { %315 = vsyncadd [#allocation3], 4294967168 }
 0x1c9   :  { %218 = vsyncpa [#allocation3], 1 }

</bundles_post_ra>
